<compile_context>
chip_gen: v7x
topology: tpu7x:2x2x1
jax: 0.10.0
libtpu: 0.0.40
codegen_flags: <defaults>
</compile_context>

<pallas_src>
import functools

import jax
import jax.numpy as jnp
from jax.experimental import pallas as pl
from jax.experimental.pallas import tpu as pltpu


def _round_up(x, m):
    return ((x + m - 1) // m) * m


def _num_parallel_cores():
    """2 on multi-TensorCore chips (v7x); 1 elsewhere (extra axis is pure overhead there)."""
    try:
        kind = jax.devices()[0].device_kind.lower()
    except Exception:
        return 1
    return 2 if "v7" in kind else 1


def _choose_tile_rows(m, c, itemsize, ncores, vmem_budget_bytes):
    """Largest row-tile whose double-buffered VMEM footprint fits the budget."""
    c_pad = _round_up(max(c, 1), 128)                       # lane padding of the logits tiles
    # Per row, x2 buffers: two logits tiles + the (tm, 1) int32 labels tile (128-lane padded).
    per_row = 2 * (2 * c_pad * itemsize + 128 * 4)
    tm = (vmem_budget_bytes // per_row) // 8 * 8
    tm = max(8, min(tm, 8192))
    rows_per_core = _round_up(pl.cdiv(m, ncores), 8)
    return min(tm, max(rows_per_core, 8))


def _cl_loss_kernel(labels_ref, la_ref, lb_ref, out_ref, *, total_rows, tiles_per_core):
    # labels_ref: (TM, 1) int32 | la_ref, lb_ref: (TM, C) native dtype
    # out_ref:    (8, 128) f32 per-core partial-sum block (resident across grid axis 1)
    c = pl.program_id(0)
    i = pl.program_id(1)

    @pl.when(i == 0)
    def _init():
        out_ref[...] = jnp.zeros_like(out_ref)

    tm, cdim = la_ref.shape

    # Ragged-tail / out-of-range-tile handling: rows whose global index >= total_rows get
    # label -1, which never matches the (non-negative) column iota, so stale VMEM contents
    # of partial edge blocks (and clamped fully-OOB tiles) contribute exactly 0.
    row0 = (c * tiles_per_core + i) * tm
    rows = row0 + jax.lax.broadcasted_iota(jnp.int32, (tm, 1), 0)
    labels = jnp.where(rows < total_rows, labels_ref[...], -1)            # (tm, 1) int32

    col = jax.lax.broadcasted_iota(jnp.int32, (1, cdim), 1)               # small iota, broadcast
    mask = col == labels                                                  # (tm, cdim) bool

    # Fused gather for both logit tensors; add + select stay in the native dtype
    # (bf16 VALU fast path on v6e/v7x); upcast to f32 only for the exact accumulation.
    vals = la_ref[...] + lb_ref[...]
    picked = jnp.where(mask, vals, jnp.zeros_like(vals))
    out_ref[...] += jnp.sum(picked.astype(jnp.float32))


def cl_loss(logits_a, logits_b, labels, batch_size, *,
            tile_rows=None, num_cores=None, allow_core_parallel=True,
            vmem_budget_bytes=24 * 1024 * 1024):
    """logits_a, logits_b: (batch_size * N, C) log-probabilities; labels: (N,) int."""
    assert logits_a.shape == logits_b.shape
    assert logits_a.dtype == logits_b.dtype
    m, c = logits_a.shape
    assert batch_size * labels.shape[0] == m, "logits rows must equal batch_size * len(labels)"

    labels_rep = jnp.tile(labels.astype(jnp.int32), batch_size)[:, None]   # (M, 1) — only 4*M bytes

    ncores = _num_parallel_cores() if num_cores is None else int(num_cores)
    if tile_rows is None:
        tm = _choose_tile_rows(m, c, jnp.dtype(logits_a.dtype).itemsize, ncores,
                               vmem_budget_bytes)
    else:
        tm = max(8, _round_up(int(tile_rows), 8))
    num_tiles = pl.cdiv(m, tm)
    tiles_per_core = pl.cdiv(num_tiles, ncores)

    def row_map(cc, ii):
        t = cc * tiles_per_core + ii
        # Clamp so the DMA never walks past the arrays; clamped tiles are masked in-kernel.
        return (jnp.minimum(t, num_tiles - 1), 0)

    kernel = functools.partial(_cl_loss_kernel, total_rows=m, tiles_per_core=tiles_per_core)

    def run(semantics):
        return pl.pallas_call(
            kernel,
            out_shape=jax.ShapeDtypeStruct((ncores * 8, 128), jnp.float32),
            grid=(ncores, tiles_per_core),
            in_specs=[
                pl.BlockSpec((tm, 1), row_map),   # repeated labels (int32)
                pl.BlockSpec((tm, c), row_map),   # logits_a, native dtype on the wire
                pl.BlockSpec((tm, c), row_map),   # logits_b
            ],
            out_specs=pl.BlockSpec((8, 128), lambda cc, ii: (cc, 0)),  # per-core partial block
            compiler_params=pltpu.CompilerParams(
                dimension_semantics=semantics,
                vmem_limit_bytes=40 * 1024 * 1024,   # safe on v7x (64 MiB/TC) and v5e/v6e
            ),
        )(labels_rep, logits_a, logits_b)

    # Prefer CORE_PARALLEL for real TensorCore sharding on multi-TC chips; fall back to the
    # portable "parallel"/"arbitrary" pair if the chip/compiler rejects it (eager call, so the
    # fallback catches compile-time failures).
    semantics_options = []
    if allow_core_parallel and ncores > 1:
        semantics_options.append((pltpu.CORE_PARALLEL, pltpu.ARBITRARY))
    semantics_options.append(("parallel", "arbitrary"))

    out, err = None, None
    for sem in semantics_options:
        try:
            out = run(sem)
            break
        except Exception as e:   # CORE_PARALLEL unsupported on this chip -> safe fallback
            err = e
    if out is None:
        raise err

    total = jnp.sum(out[0::8, 0])          # one scalar partial per core block
    return -total / jnp.float32(m)         # NLLLoss 'mean' for a and b, summed


if __name__ == "__main__":
    key = jax.random.PRNGKey(0)
    ka, kb, kl, k2a, k2b, k2l = jax.random.split(key, 6)

    # --- Test 1: tiny f32 case (batch_size=2, N=4 labels, C=8 classes, single tile) ---
    batch_size, n_labels, num_classes = 2, 4, 8
    M = batch_size * n_labels
    logits_a = jax.nn.log_softmax(jax.random.normal(ka, (M, num_classes), jnp.float32), axis=-1)
    logits_b = jax.nn.log_softmax(jax.random.normal(kb, (M, num_classes), jnp.float32), axis=-1)
    labels = jax.random.randint(kl, (n_labels,), 0, num_classes, dtype=jnp.int32)

    loss = jax.block_until_ready(cl_loss(logits_a, logits_b, labels, batch_size))

    labels_rep = jnp.tile(labels, batch_size)
    rows = jnp.arange(M)
    ref = -jnp.mean(logits_a[rows, labels_rep]) - jnp.mean(logits_b[rows, labels_rep])
    assert jnp.allclose(loss, ref, rtol=1e-5, atol=1e-5), (loss, ref)

    # --- Test 2: bf16, auto tile size, no wrapper padding (in-kernel tail mask) ---
    batch_size2, n_labels2, num_classes2 = 4, 300, 40
    M2 = batch_size2 * n_labels2
    logits_a2 = jax.nn.log_softmax(
        jax.random.normal(k2a, (M2, num_classes2), jnp.float32), axis=-1).astype(jnp.bfloat16)
    logits_b2 = jax.nn.log_softmax(
        jax.random.normal(k2b, (M2, num_classes2), jnp.float32), axis=-1).astype(jnp.bfloat16)
    labels2 = jax.random.randint(k2l, (n_labels2,), 0, num_classes2, dtype=jnp.int32)

    loss2 = jax.block_until_ready(cl_loss(logits_a2, logits_b2, labels2, batch_size2))

    labels_rep2 = jnp.tile(labels2, batch_size2)
    rows2 = jnp.arange(M2)
    la32, lb32 = logits_a2.astype(jnp.float32), logits_b2.astype(jnp.float32)
    ref2 = -jnp.mean(la32[rows2, labels_rep2]) - jnp.mean(lb32[rows2, labels_rep2])
    assert jnp.allclose(loss2, ref2, rtol=1e-3, atol=1e-3), (loss2, ref2)

    # --- Test 3: forced small tiles + 2-way core split: exercises the ragged tail mask,
    #             the clamped out-of-range tile, and multi-step accumulation.
    #             Uses the portable "parallel" semantics so it runs on any chip. ---
    loss3 = jax.block_until_ready(
        cl_loss(logits_a2, logits_b2, labels2, batch_size2,
                tile_rows=256, num_cores=2, allow_core_parallel=False))
    assert jnp.allclose(loss3, ref2, rtol=1e-3, atol=1e-3), (loss3, ref2)

    print("KERNEL_OK")
</pallas_src>

<mosaic_0001>
module attributes {stable_mosaic.version = 11 : i64} {
  func.func @_cl_loss_kernel(%arg0: i32, %arg1: i32, %arg2: memref<8x1xi32, #tpu.memory_space<vmem>>, %arg3: memref<8x8xf32, #tpu.memory_space<vmem>>, %arg4: memref<8x8xf32, #tpu.memory_space<vmem>>, %arg5: memref<8x128xf32, #tpu.memory_space<vmem>>) attributes {dimension_semantics = [#tpu.dimension_semantics<parallel>, #tpu.dimension_semantics<arbitrary>], iteration_bounds = array<i64: 1, 1>, scalar_prefetch = 0 : i64, scratch_operands = 0 : i64, tpu.core_type = #tpu.core_type<tc>, window_params = [{transform_indices = @transform_0, window_bounds = array<i64: 8, 1>}, {transform_indices = @transform_1, window_bounds = array<i64: 8, 8>}, {transform_indices = @transform_2, window_bounds = array<i64: 8, 8>}, {transform_indices = @transform_3, window_bounds = array<i64: 8, 128>}]} {
    %c0_i32 = arith.constant 0 : i32
    %0 = arith.cmpi eq, %arg1, %c0_i32 : i32
    %1 = arith.extui %0 : i1 to i32
    %c0_i32_0 = arith.constant 0 : i32
    %2 = arith.cmpi ne, %1, %c0_i32_0 : i32
    scf.if %2 {
      %cst_12 = arith.constant 0.000000e+00 : f32
      %31 = vector.broadcast %cst_12 : f32 to vector<8x128xf32>
      %c0_13 = arith.constant 0 : index
      %c0_14 = arith.constant 0 : index
      %32 = vector.load %arg5[%c0_13, %c0_14] : memref<8x128xf32, #tpu.memory_space<vmem>>, vector<8x128xf32>
      tpu.vector_store %arg5[%c0_13, %c0_14], %31 {strides = array<i32>} : memref<8x128xf32, #tpu.memory_space<vmem>>, vector<8x128xf32>,
    } else {
    }
    %c1_i32 = arith.constant 1 : i32
    %3 = arith.muli %arg0, %c1_i32 : i32
    %4 = arith.addi %3, %arg1 : i32
    %c8_i32 = arith.constant 8 : i32
    %5 = arith.muli %4, %c8_i32 : i32
    %6 = tpu.iota {dimensions = array<i32: 0>} : vector<8x1xi32>
    %7 = vector.broadcast %5 : i32 to vector<8x1xi32>
    %8 = arith.addi %7, %6 : vector<8x1xi32>
    %c8_i32_1 = arith.constant 8 : i32
    %9 = vector.broadcast %c8_i32_1 : i32 to vector<8x1xi32>
    %10 = arith.cmpi slt, %8, %9 : vector<8x1xi32>
    %c0 = arith.constant 0 : index
    %c0_2 = arith.constant 0 : index
    %11 = vector.load %arg2[%c0, %c0_2] : memref<8x1xi32, #tpu.memory_space<vmem>>, vector<8x1xi32>
    %c-1_i32 = arith.constant -1 : i32
    %12 = vector.broadcast %c-1_i32 : i32 to vector<8x1xi32>
    %13 = arith.select %10, %11, %12 : vector<8x1xi1>, vector<8x1xi32>
    %14 = tpu.iota {dimensions = array<i32: 1>} : vector<1x8xi32>
    %15 = vector.broadcast %14 : vector<1x8xi32> to vector<8x8xi32>
    %16 = vector.broadcast %13 : vector<8x1xi32> to vector<8x8xi32>
    %17 = arith.cmpi eq, %15, %16 : vector<8x8xi32>
    %c0_3 = arith.constant 0 : index
    %c0_4 = arith.constant 0 : index
    %18 = vector.load %arg3[%c0_3, %c0_4] : memref<8x8xf32, #tpu.memory_space<vmem>>, vector<8x8xf32>
    %c0_5 = arith.constant 0 : index
    %c0_6 = arith.constant 0 : index
    %19 = vector.load %arg4[%c0_5, %c0_6] : memref<8x8xf32, #tpu.memory_space<vmem>>, vector<8x8xf32>
    %20 = arith.addf %18, %19 : vector<8x8xf32>
    %cst = arith.constant 0.000000e+00 : f32
    %21 = vector.broadcast %cst : f32 to vector<8x8xf32>
    %22 = arith.select %17, %20, %21 : vector<8x8xi1>, vector<8x8xf32>
    %c0_7 = arith.constant 0 : index
    %c0_8 = arith.constant 0 : index
    %23 = vector.load %arg5[%c0_7, %c0_8] : memref<8x128xf32, #tpu.memory_space<vmem>>, vector<8x128xf32>
    %24 = vector.shape_cast %22 : vector<8x8xf32> to vector<1x8x8xf32>
    %cst_9 = arith.constant dense<0.000000e+00> : vector<1xf32>
    %25 = vector.multi_reduction <add>, %24, %cst_9 [1, 2] : vector<1x8x8xf32> to vector<1xf32>
    %26 = vector.shape_cast %25 : vector<1xf32> to vector<1x1x1xf32>
    %27 = vector.extract %26[0, 0, 0] : f32 from vector<1x1x1xf32>
    %28 = vector.broadcast %27 : f32 to vector<8x128xf32>
    %29 = arith.addf %23, %28 : vector<8x128xf32>
    %c0_10 = arith.constant 0 : index
    %c0_11 = arith.constant 0 : index
    %30 = vector.load %arg5[%c0_10, %c0_11] : memref<8x128xf32, #tpu.memory_space<vmem>>, vector<8x128xf32>
    tpu.vector_store %arg5[%c0_10, %c0_11], %29 {strides = array<i32>} : memref<8x128xf32, #tpu.memory_space<vmem>>, vector<8x128xf32>,
    return
  }
  func.func @transform_0(%arg0: i32, %arg1: i32) -> (i32, i32) {
    %c1_i32 = arith.constant 1 : i32
    %0 = arith.muli %arg0, %c1_i32 : i32
    %1 = arith.addi %0, %arg1 : i32
    %c0_i32 = arith.constant 0 : i32
    %2 = arith.minsi %1, %c0_i32 : i32
    %c0_i32_0 = arith.constant 0 : i32
    %c0_i32_1 = arith.constant 0 : i32
    return %2, %c0_i32_0 : i32, i32
  }
  func.func @transform_1(%arg0: i32, %arg1: i32) -> (i32, i32) {
    %c1_i32 = arith.constant 1 : i32
    %0 = arith.muli %arg0, %c1_i32 : i32
    %1 = arith.addi %0, %arg1 : i32
    %c0_i32 = arith.constant 0 : i32
    %2 = arith.minsi %1, %c0_i32 : i32
    %c0_i32_0 = arith.constant 0 : i32
    %c0_i32_1 = arith.constant 0 : i32
    return %2, %c0_i32_0 : i32, i32
  }
  func.func @transform_2(%arg0: i32, %arg1: i32) -> (i32, i32) {
    %c1_i32 = arith.constant 1 : i32
    %0 = arith.muli %arg0, %c1_i32 : i32
    %1 = arith.addi %0, %arg1 : i32
    %c0_i32 = arith.constant 0 : i32
    %2 = arith.minsi %1, %c0_i32 : i32
    %c0_i32_0 = arith.constant 0 : i32
    %c0_i32_1 = arith.constant 0 : i32
    return %2, %c0_i32_0 : i32, i32
  }
  func.func @transform_3(%arg0: i32, %arg1: i32) -> (i32, i32) {
    %c0_i32 = arith.constant 0 : i32
    %c0_i32_0 = arith.constant 0 : i32
    return %arg0, %c0_i32 : i32, i32
  }
}

</mosaic_0001>

<bundles_post_ra>
// kernel: tpu_custom_call.1
= control target key start
LH: loop header
LB: loop body
LE: loop exit
PB: predicated region body
PF: predicated region fallthrough
CT: control target
= control target key end

     0   :  { %v197_v1 = vmov 0   ;;  %s240_s0 = inlined_call_operand.vmem [shape: s32[8,1], index: 0, kind: input, shape index: {}]   ;;  %s241_s1 = inlined_call_operand.vmem [shape: f32[8,8], index: 1, kind: input, shape index: {}]   ;;  %s242_s2 = inlined_call_operand.vmem [shape: f32[8,8], index: 2, kind: input, shape index: {}]   ;;  %s243_s3 = inlined_call_operand.hbm [shape: f32[8,128], index: 3, kind: output, shape index: {}]  }
   0x1   :  { %v108_v0 = vld [vmem:[%s240_s0] sm:$0xff]  ;;  %172 = vset.pattern.permute.xlu0 %v197_v1 }
   0x2   :  { %8 = vsyncpa [#allocation3], 0  ;;  %113 = vperm.xlu0 %172, %v108_v0   ;;  %v110_v2 = vlaneseq  ;;  %v116_v3 = vld [vmem:[%s241_s1] sm:$0xff]  ;;  %vm121_vm0 = vcmask 64512   ;;  %s198_s0 = smov [#allocation2]  }
   0x3   :  { %v117_v4 = vld [vmem:[%s242_s2] sm:$0xff]  ;;  %s141_s1 = sshll.u32 %s198_s0, 4  ;;  %s142_s1 = int_to_ptr.vmem [resolvable:$true] %s141_s1 }
   0x4   :  { %v111_v5 = vand.u32 127, %v110_v2  ;;  %v118_v6 = vadd.f32 %v117_v4, %v116_v3  ;;  %s173_s2 = scalar_lea.vmem %s142_s1, 128  ;;  %p178_p1 = scmp.lt.s32.totalorder %s142_s1, %s142_s1 }
   0x5   :  { %p174_p0 = scmp.ne.s32.totalorder %s142_s1, %s173_s2  ;;  %p179_p2 = scmp.lt.s32.totalorder %s173_s2, %s173_s2 }
   0x7   :  { %p180_p3 = por %p179_p2, %p178_p1 }
   0x9   :  { %p181_p4 = pnand %p180_p3, %p174_p0 }
  0x81   :  { %v114_v7 = vpop.permute.xlu0 %113 }
  0x82   :  { %vm115_vm1 = vcmp.eq.s32.totalorder %v111_v5, %v114_v7 }
  0x83   :  { %v119_v8 = vsel %vm115_vm1, %v118_v6, 0.0 }
  0x84   :  { %v122_v9 = vsel %vm121_vm0, %v119_v8, 0.0 }
  0x85   :  { %123 = vadd.xlane.f32.xlu0 %v122_v9 }
 0x112   :  { %v124_v10 = vpop.xlane.xlu0 %123 }
 0x113   :  { %v125_v11 = vrot.slane %v124_v10, 4 }
 0x115   :  { %v126_v12 = vadd.f32 %v125_v11, %v124_v10 }
 0x117   :  { %v127_v13 = vrot.slane %v126_v12, 2 }
 0x119   :  { %v128_v14 = vadd.f32 %v127_v13, %v126_v12 }
 0x11b   :  { %v129_v15 = vrot.slane %v128_v14, 1 }
 0x11d   :  { %v130_v16 = vadd.f32 %v129_v15, %v128_v14 }
 0x11f   :  { %167 = vpush %v130_v16 }
 0x150   :  { %s168_s18 = spop %167 }
 0x151   :  { %v132_v17 = vstv %s168_s18 }
 0x152   :  { %134 = vst [vmem:[#allocation2] sm:$0xff] %v132_v17 }
 0x153   :  { %184 = shalt.err (!%p181_p4)
}
 0x154   :  { %s185_s21 = scalar_lea.hbm %s243_s3, 128 }
 0x155   :  { %p186_p5 = scmp.ne.s32.totalorder %s243_s3, %s185_s21  ;;  %p189_p6 = scmp.lt.u32.totalorder %s185_s21, %s243_s3 }
 0x157   :  { %p191_p7 = pnand %p189_p6, %p186_p5 }
 0x159   :  { %194 = shalt.err (!%p191_p7)
}
 0x15a   :  { %144 = dma.vmem_to_hbm [thread:$0]  %s142_s1, 128, %s243_s3, [#allocation3]  }
 0x15b   :  { %195 = dma.done.wait [#allocation3], 128  }
 0x15c   :  { %196 = vsyncadd [#allocation3], 4294967168 }
 0x15d   :  { %148 = vsyncpa [#allocation3], 1 }

</bundles_post_ra>
